<compile_context>
chip_gen: v6e
topology: v6e:2x2x1
jax: 0.10.0
libtpu: 0.0.40
codegen_flags: <defaults>
</compile_context>

<pallas_src>
import functools

import jax
import jax.numpy as jnp
from jax.experimental import pallas as pl
from jax.experimental.pallas import tpu as pltpu

# Small shapes consistent with the module.
EMBEDDING_DIM = 32
HIDDEN_DIM = 32
VOCAB_SIZE = 50
LABEL_SIZE = 4
SEQ_LEN = 8


def bilstm_kernel(sent_ref, emb_ref, w_ref, out_ref, *,
                  hidden_dim, embed_dim, label_size, seq_len):
    H = hidden_dim
    E = embed_dim
    G = 4 * H

    # Static row offsets into the packed weight slab (all 8-sublane aligned).
    o_wih_f = 0
    o_whh_f = E
    o_wih_b = E + H
    o_wout_f = 2 * E + H
    o_wout_b = 2 * E + 2 * H
    o_bias = 2 * E + 3 * H          # +0: b_fwd, +1: b_bwd, +2: b_out

    # ---- embedding gather: token ids are in SMEM (scalar prefetch) ----------
    rows = [emb_ref[pl.ds(sent_ref[t], 1), :] for t in range(seq_len)]
    x = jnp.concatenate(rows, axis=0)                                # (seq, E)

    # ---- input projections for the forward direction: one MXU matmul --------
    wih_f = w_ref[o_wih_f:o_wih_f + E, :]                            # (E, 4H)
    b_f = w_ref[o_bias:o_bias + 1, :]                                # (1, 4H)
    xg = jnp.dot(x, wih_f, preferred_element_type=jnp.float32) + b_f  # (seq, 4H)

    whh_f = w_ref[o_whh_f:o_whh_f + H, :]                            # (H, 4H)

    # Gate lane mask (hoisted out of the unrolled loop).
    lane = jax.lax.broadcasted_iota(jnp.int32, (1, G), 1)
    is_g_lane = (lane >= 2 * H) & (lane < 3 * H)

    def activate(gates):
        # One full-width sigmoid + one full-width tanh; select tanh on g lanes.
        act = jnp.where(is_g_lane, jnp.tanh(gates), jax.nn.sigmoid(gates))
        i = act[:, 0 * H:1 * H]
        f = act[:, 1 * H:2 * H]
        g = act[:, 2 * H:3 * H]
        o = act[:, 3 * H:4 * H]
        return i, f, g, o

    def first_step(gates):
        # h0 = c0 = 0  =>  no recurrent matmul, c_new = i * g.
        i, _, g, o = activate(gates)
        c = i * g
        h = o * jnp.tanh(c)
        return h, c

    def step(gates, c):
        i, f, g, o = activate(gates)
        c_new = f * c + i * g
        h_new = o * jnp.tanh(c_new)
        return h_new, c_new

    # ---- forward-direction recurrence, fully unrolled ------------------------
    h, c = first_step(xg[0:1, :])
    for t in range(1, seq_len):
        gates = xg[t:t + 1, :] + jnp.dot(h, whh_f,
                                         preferred_element_type=jnp.float32)
        h, c = step(gates, c)
    h_f = h                                                          # (1, H)

    # ---- backward direction: lstm_out[-1] needs only its first step on x[T-1]
    wih_b = w_ref[o_wih_b:o_wih_b + E, :]                            # (E, 4H)
    b_b = w_ref[o_bias + 1:o_bias + 2, :]                            # (1, 4H)
    gates_b = jnp.dot(rows[seq_len - 1], wih_b,
                      preferred_element_type=jnp.float32) + b_b
    h_b, _ = first_step(gates_b)                                     # (1, H)

    # ---- hidden2tag as two partial matmuls (no lane concat) + softmax -------
    wout_f = w_ref[o_wout_f:o_wout_f + H, :]                         # (H, 4H) pad
    wout_b = w_ref[o_wout_b:o_wout_b + H, :]
    bout = w_ref[o_bias + 2:o_bias + 3, :]
    logits_full = (jnp.dot(h_f, wout_f, preferred_element_type=jnp.float32)
                   + jnp.dot(h_b, wout_b, preferred_element_type=jnp.float32)
                   + bout)                                           # (1, 4H)
    logits = logits_full[:, :label_size]                             # (1, L)
    z = logits - jnp.max(logits, axis=1, keepdims=True)
    e = jnp.exp(z)
    out_ref[...] = e / jnp.sum(e, axis=1, keepdims=True)


@jax.jit
def bilstm_classifier_forward(sentence, emb_table, weight_slab):
    """sentence: (seq,) int32. Returns (1, label_size) softmax probabilities."""
    seq_len = sentence.shape[0]
    kernel = functools.partial(bilstm_kernel,
                               hidden_dim=HIDDEN_DIM,
                               embed_dim=EMBEDDING_DIM,
                               label_size=LABEL_SIZE,
                               seq_len=seq_len)
    vmem = pl.BlockSpec(memory_space=pltpu.MemorySpace.VMEM)
    return pl.pallas_call(
        kernel,
        out_shape=jax.ShapeDtypeStruct((1, LABEL_SIZE), jnp.float32),
        grid_spec=pltpu.PrefetchScalarGridSpec(
            num_scalar_prefetch=1,            # sentence -> SMEM
            grid=(),
            in_specs=[vmem, vmem],            # embedding table, weight slab
            out_specs=vmem,
        ),
    )(sentence, emb_table, weight_slab)


def pack_params(params):
    """One-time weight prep: transpose, combine biases, pack one VMEM slab."""
    H, E, L = HIDDEN_DIM, EMBEDDING_DIM, LABEL_SIZE
    G = 4 * H
    wih_f_t = params["w_ih_f"].T.astype(jnp.float32)                  # (E, G)
    whh_f_t = params["w_hh_f"].T.astype(jnp.float32)                  # (H, G)
    wih_b_t = params["w_ih_b"].T.astype(jnp.float32)                  # (E, G)
    b_f = (params["b_ih_f"] + params["b_hh_f"]).astype(jnp.float32)[None, :]
    b_b = (params["b_ih_b"] + params["b_hh_b"]).astype(jnp.float32)[None, :]
    w_out_t = params["w_out"].T.astype(jnp.float32)                   # (2H, L)
    wout_f = jnp.zeros((H, G), jnp.float32).at[:, :L].set(w_out_t[:H])
    wout_b = jnp.zeros((H, G), jnp.float32).at[:, :L].set(w_out_t[H:])
    bout = jnp.zeros((1, G), jnp.float32).at[:, :L].set(
        params["b_out"].astype(jnp.float32)[None, :])
    pad = jnp.zeros((5, G), jnp.float32)       # pad bias rows to 8-sublane tile
    slab = jnp.concatenate(
        [wih_f_t, whh_f_t, wih_b_t, wout_f, wout_b, b_f, b_b, bout, pad], axis=0)
    emb = params["embedding"].astype(jnp.float32)
    return emb, slab                            # (VOCAB, E), (168, 128)


def init_params(key):
    ks = jax.random.split(key, 11)
    H, E = HIDDEN_DIM, EMBEDDING_DIM
    s = 1.0 / (H ** 0.5)
    return {
        "embedding": jax.random.normal(ks[0], (VOCAB_SIZE, E), jnp.float32),
        "w_ih_f": jax.random.uniform(ks[1], (4 * H, E), jnp.float32, -s, s),
        "w_hh_f": jax.random.uniform(ks[2], (4 * H, H), jnp.float32, -s, s),
        "b_ih_f": jax.random.uniform(ks[3], (4 * H,), jnp.float32, -s, s),
        "b_hh_f": jax.random.uniform(ks[4], (4 * H,), jnp.float32, -s, s),
        "w_ih_b": jax.random.uniform(ks[5], (4 * H, E), jnp.float32, -s, s),
        "w_hh_b": jax.random.uniform(ks[6], (4 * H, H), jnp.float32, -s, s),
        "b_ih_b": jax.random.uniform(ks[7], (4 * H,), jnp.float32, -s, s),
        "b_hh_b": jax.random.uniform(ks[8], (4 * H,), jnp.float32, -s, s),
        "w_out": jax.random.uniform(ks[9], (LABEL_SIZE, 2 * H), jnp.float32, -s, s),
        "b_out": jax.random.uniform(ks[10], (LABEL_SIZE,), jnp.float32, -s, s),
    }


def reference_forward(sentence, params):
    """Pure-JAX reference reproducing the PyTorch forward (sanity check)."""
    H = HIDDEN_DIM
    x = jnp.take(params["embedding"], sentence, axis=0).astype(jnp.float32)

    def run_dir(xs, w_ih, w_hh, b):
        def step(carry, xt):
            h, c = carry
            gates = xt @ w_ih.T + h @ w_hh.T + b
            i = jax.nn.sigmoid(gates[:, 0 * H:1 * H])
            f = jax.nn.sigmoid(gates[:, 1 * H:2 * H])
            g = jnp.tanh(gates[:, 2 * H:3 * H])
            o = jax.nn.sigmoid(gates[:, 3 * H:4 * H])
            c = f * c + i * g
            h = o * jnp.tanh(c)
            return (h, c), h
        h0 = jnp.zeros((1, H), jnp.float32)
        (_, _), hs = jax.lax.scan(step, (h0, h0), xs)
        return hs  # (seq, 1, H)

    hs_f = run_dir(x[:, None, :], params["w_ih_f"], params["w_hh_f"],
                   params["b_ih_f"] + params["b_hh_f"])
    hs_b = run_dir(x[::-1, None, :], params["w_ih_b"], params["w_hh_b"],
                   params["b_ih_b"] + params["b_hh_b"])[::-1]
    last = jnp.concatenate([hs_f[-1], hs_b[-1]], axis=1)   # (1, 2H)
    y = last @ params["w_out"].T + params["b_out"][None, :]
    return jax.nn.softmax(y, axis=1)


if __name__ == "__main__":
    key = jax.random.PRNGKey(0)
    pkey, skey = jax.random.split(key)
    params = init_params(pkey)
    emb_table, weight_slab = pack_params(params)   # one-time weight prep
    sentence = jax.random.randint(skey, (SEQ_LEN,), 0, VOCAB_SIZE, dtype=jnp.int32)

    out = bilstm_classifier_forward(sentence, emb_table, weight_slab)
    out = jax.block_until_ready(out)

    ref = jax.block_until_ready(reference_forward(sentence, params))
    assert out.shape == (1, LABEL_SIZE)
    assert jnp.allclose(out, ref, rtol=1e-3, atol=1e-3), (out, ref)
    assert jnp.allclose(jnp.sum(out), 1.0, atol=1e-4)

    print("KERNEL_OK")
</pallas_src>

<mosaic_0001>
module attributes {stable_mosaic.version = 11 : i64} {
  func.func @bilstm_kernel(%arg0: memref<8xi32, #tpu.memory_space<smem>>, %arg1: memref<50x32xf32, #tpu.memory_space<vmem>>, %arg2: memref<168x128xf32, #tpu.memory_space<vmem>>, %arg3: memref<1x4xf32, #tpu.memory_space<vmem>>) attributes {dimension_semantics = [], scalar_prefetch = 1 : i64, scratch_operands = 0 : i64, tpu.core_type = #tpu.core_type<tc>} {
    %c0 = arith.constant 0 : index
    %0 = memref.load %arg0[%c0] : memref<8xi32, #tpu.memory_space<smem>>
    %1 = arith.index_cast %0 : i32 to index
    %c0_0 = arith.constant 0 : index
    %2 = vector.load %arg1[%1, %c0_0] : memref<50x32xf32, #tpu.memory_space<vmem>>, vector<1x32xf32>
    %c1 = arith.constant 1 : index
    %3 = memref.load %arg0[%c1] : memref<8xi32, #tpu.memory_space<smem>>
    %4 = arith.index_cast %3 : i32 to index
    %c0_1 = arith.constant 0 : index
    %5 = vector.load %arg1[%4, %c0_1] : memref<50x32xf32, #tpu.memory_space<vmem>>, vector<1x32xf32>
    %c2 = arith.constant 2 : index
    %6 = memref.load %arg0[%c2] : memref<8xi32, #tpu.memory_space<smem>>
    %7 = arith.index_cast %6 : i32 to index
    %c0_2 = arith.constant 0 : index
    %8 = vector.load %arg1[%7, %c0_2] : memref<50x32xf32, #tpu.memory_space<vmem>>, vector<1x32xf32>
    %c3 = arith.constant 3 : index
    %9 = memref.load %arg0[%c3] : memref<8xi32, #tpu.memory_space<smem>>
    %10 = arith.index_cast %9 : i32 to index
    %c0_3 = arith.constant 0 : index
    %11 = vector.load %arg1[%10, %c0_3] : memref<50x32xf32, #tpu.memory_space<vmem>>, vector<1x32xf32>
    %c4 = arith.constant 4 : index
    %12 = memref.load %arg0[%c4] : memref<8xi32, #tpu.memory_space<smem>>
    %13 = arith.index_cast %12 : i32 to index
    %c0_4 = arith.constant 0 : index
    %14 = vector.load %arg1[%13, %c0_4] : memref<50x32xf32, #tpu.memory_space<vmem>>, vector<1x32xf32>
    %c5 = arith.constant 5 : index
    %15 = memref.load %arg0[%c5] : memref<8xi32, #tpu.memory_space<smem>>
    %16 = arith.index_cast %15 : i32 to index
    %c0_5 = arith.constant 0 : index
    %17 = vector.load %arg1[%16, %c0_5] : memref<50x32xf32, #tpu.memory_space<vmem>>, vector<1x32xf32>
    %c6 = arith.constant 6 : index
    %18 = memref.load %arg0[%c6] : memref<8xi32, #tpu.memory_space<smem>>
    %19 = arith.index_cast %18 : i32 to index
    %c0_6 = arith.constant 0 : index
    %20 = vector.load %arg1[%19, %c0_6] : memref<50x32xf32, #tpu.memory_space<vmem>>, vector<1x32xf32>
    %c7 = arith.constant 7 : index
    %21 = memref.load %arg0[%c7] : memref<8xi32, #tpu.memory_space<smem>>
    %22 = arith.index_cast %21 : i32 to index
    %c0_7 = arith.constant 0 : index
    %23 = vector.load %arg1[%22, %c0_7] : memref<50x32xf32, #tpu.memory_space<vmem>>, vector<1x32xf32>
    %24 = tpu.concatenate %2, %5, %8, %11, %14, %17, %20, %23 in 0 : vector<1x32xf32>, vector<1x32xf32>, vector<1x32xf32>, vector<1x32xf32>, vector<1x32xf32>, vector<1x32xf32>, vector<1x32xf32>, vector<1x32xf32> -> vector<8x32xf32>
    %c0_8 = arith.constant 0 : index
    %c0_9 = arith.constant 0 : index
    %25 = vector.load %arg2[%c0_8, %c0_9] : memref<168x128xf32, #tpu.memory_space<vmem>>, vector<32x128xf32>
    %c160 = arith.constant 160 : index
    %c0_10 = arith.constant 0 : index
    %26 = vector.load %arg2[%c160, %c0_10] : memref<168x128xf32, #tpu.memory_space<vmem>>, vector<1x128xf32>
    %cst = arith.constant dense<0.000000e+00> : vector<8x128xf32>
    %27 = tpu.matmul %24, %25, %cst {dimension_numbers = #tpu.dot_dimension_numbers<[1], [0], [0], [1], [0, 0, 1, 1], [], []>} : vector<8x32xf32>, vector<32x128xf32>, vector<8x128xf32> -> vector<8x128xf32>
    %28 = vector.broadcast %26 : vector<1x128xf32> to vector<8x128xf32>
    %29 = arith.addf %27, %28 : vector<8x128xf32>
    %c32 = arith.constant 32 : index
    %c0_11 = arith.constant 0 : index
    %30 = vector.load %arg2[%c32, %c0_11] : memref<168x128xf32, #tpu.memory_space<vmem>>, vector<32x128xf32>
    %31 = tpu.iota {dimensions = array<i32: 1>} : vector<1x128xi32>
    %c64_i32 = arith.constant 64 : i32
    %32 = vector.broadcast %c64_i32 : i32 to vector<1x128xi32>
    %33 = arith.cmpi sge, %31, %32 : vector<1x128xi32>
    %c96_i32 = arith.constant 96 : i32
    %34 = vector.broadcast %c96_i32 : i32 to vector<1x128xi32>
    %35 = arith.cmpi slt, %31, %34 : vector<1x128xi32>
    %36 = arith.andi %33, %35 : vector<1x128xi1>
    %37 = vector.extract_strided_slice %29 {offsets = [0, 0], sizes = [1, 128], strides = [1, 1]} : vector<8x128xf32> to vector<1x128xf32>
    %38 = math.tanh %37 : vector<1x128xf32>
    %39 = arith.negf %37 : vector<1x128xf32>
    %40 = math.exp %39 : vector<1x128xf32>
    %cst_12 = arith.constant 1.000000e+00 : f32
    %41 = vector.broadcast %cst_12 : f32 to vector<1x128xf32>
    %42 = arith.addf %41, %40 : vector<1x128xf32>
    %43 = arith.divf %41, %42 : vector<1x128xf32>
    %44 = arith.select %36, %38, %43 : vector<1x128xi1>, vector<1x128xf32>
    %45 = vector.extract_strided_slice %44 {offsets = [0, 0], sizes = [1, 32], strides = [1, 1]} : vector<1x128xf32> to vector<1x32xf32>
    %46 = vector.extract_strided_slice %44 {offsets = [0, 64], sizes = [1, 32], strides = [1, 1]} : vector<1x128xf32> to vector<1x32xf32>
    %47 = vector.extract_strided_slice %44 {offsets = [0, 96], sizes = [1, 32], strides = [1, 1]} : vector<1x128xf32> to vector<1x32xf32>
    %48 = arith.mulf %45, %46 : vector<1x32xf32>
    %49 = math.tanh %48 : vector<1x32xf32>
    %50 = arith.mulf %47, %49 : vector<1x32xf32>
    %51 = vector.extract_strided_slice %29 {offsets = [1, 0], sizes = [1, 128], strides = [1, 1]} : vector<8x128xf32> to vector<1x128xf32>
    %cst_13 = arith.constant dense<0.000000e+00> : vector<1x128xf32>
    %52 = tpu.matmul %50, %30, %cst_13 {dimension_numbers = #tpu.dot_dimension_numbers<[1], [0], [0], [1], [0, 0, 1, 1], [], []>} : vector<1x32xf32>, vector<32x128xf32>, vector<1x128xf32> -> vector<1x128xf32>
    %53 = arith.addf %51, %52 : vector<1x128xf32>
    %54 = math.tanh %53 : vector<1x128xf32>
    %55 = arith.negf %53 : vector<1x128xf32>
    %56 = math.exp %55 : vector<1x128xf32>
    %cst_14 = arith.constant 1.000000e+00 : f32
    %57 = vector.broadcast %cst_14 : f32 to vector<1x128xf32>
    %58 = arith.addf %57, %56 : vector<1x128xf32>
    %59 = arith.divf %57, %58 : vector<1x128xf32>
    %60 = arith.select %36, %54, %59 : vector<1x128xi1>, vector<1x128xf32>
    %61 = vector.extract_strided_slice %60 {offsets = [0, 0], sizes = [1, 32], strides = [1, 1]} : vector<1x128xf32> to vector<1x32xf32>
    %62 = vector.extract_strided_slice %60 {offsets = [0, 32], sizes = [1, 32], strides = [1, 1]} : vector<1x128xf32> to vector<1x32xf32>
    %63 = vector.extract_strided_slice %60 {offsets = [0, 64], sizes = [1, 32], strides = [1, 1]} : vector<1x128xf32> to vector<1x32xf32>
    %64 = vector.extract_strided_slice %60 {offsets = [0, 96], sizes = [1, 32], strides = [1, 1]} : vector<1x128xf32> to vector<1x32xf32>
    %65 = arith.mulf %62, %48 : vector<1x32xf32>
    %66 = arith.mulf %61, %63 : vector<1x32xf32>
    %67 = arith.addf %65, %66 : vector<1x32xf32>
    %68 = math.tanh %67 : vector<1x32xf32>
    %69 = arith.mulf %64, %68 : vector<1x32xf32>
    %70 = vector.extract_strided_slice %29 {offsets = [2, 0], sizes = [1, 128], strides = [1, 1]} : vector<8x128xf32> to vector<1x128xf32>
    %cst_15 = arith.constant dense<0.000000e+00> : vector<1x128xf32>
    %71 = tpu.matmul %69, %30, %cst_15 {dimension_numbers = #tpu.dot_dimension_numbers<[1], [0], [0], [1], [0, 0, 1, 1], [], []>} : vector<1x32xf32>, vector<32x128xf32>, vector<1x128xf32> -> vector<1x128xf32>
    %72 = arith.addf %70, %71 : vector<1x128xf32>
    %73 = math.tanh %72 : vector<1x128xf32>
    %74 = arith.negf %72 : vector<1x128xf32>
    %75 = math.exp %74 : vector<1x128xf32>
    %cst_16 = arith.constant 1.000000e+00 : f32
    %76 = vector.broadcast %cst_16 : f32 to vector<1x128xf32>
    %77 = arith.addf %76, %75 : vector<1x128xf32>
    %78 = arith.divf %76, %77 : vector<1x128xf32>
    %79 = arith.select %36, %73, %78 : vector<1x128xi1>, vector<1x128xf32>
    %80 = vector.extract_strided_slice %79 {offsets = [0, 0], sizes = [1, 32], strides = [1, 1]} : vector<1x128xf32> to vector<1x32xf32>
    %81 = vector.extract_strided_slice %79 {offsets = [0, 32], sizes = [1, 32], strides = [1, 1]} : vector<1x128xf32> to vector<1x32xf32>
    %82 = vector.extract_strided_slice %79 {offsets = [0, 64], sizes = [1, 32], strides = [1, 1]} : vector<1x128xf32> to vector<1x32xf32>
    %83 = vector.extract_strided_slice %79 {offsets = [0, 96], sizes = [1, 32], strides = [1, 1]} : vector<1x128xf32> to vector<1x32xf32>
    %84 = arith.mulf %81, %67 : vector<1x32xf32>
    %85 = arith.mulf %80, %82 : vector<1x32xf32>
    %86 = arith.addf %84, %85 : vector<1x32xf32>
    %87 = math.tanh %86 : vector<1x32xf32>
    %88 = arith.mulf %83, %87 : vector<1x32xf32>
    %89 = vector.extract_strided_slice %29 {offsets = [3, 0], sizes = [1, 128], strides = [1, 1]} : vector<8x128xf32> to vector<1x128xf32>
    %cst_17 = arith.constant dense<0.000000e+00> : vector<1x128xf32>
    %90 = tpu.matmul %88, %30, %cst_17 {dimension_numbers = #tpu.dot_dimension_numbers<[1], [0], [0], [1], [0, 0, 1, 1], [], []>} : vector<1x32xf32>, vector<32x128xf32>, vector<1x128xf32> -> vector<1x128xf32>
    %91 = arith.addf %89, %90 : vector<1x128xf32>
    %92 = math.tanh %91 : vector<1x128xf32>
    %93 = arith.negf %91 : vector<1x128xf32>
    %94 = math.exp %93 : vector<1x128xf32>
    %cst_18 = arith.constant 1.000000e+00 : f32
    %95 = vector.broadcast %cst_18 : f32 to vector<1x128xf32>
    %96 = arith.addf %95, %94 : vector<1x128xf32>
    %97 = arith.divf %95, %96 : vector<1x128xf32>
    %98 = arith.select %36, %92, %97 : vector<1x128xi1>, vector<1x128xf32>
    %99 = vector.extract_strided_slice %98 {offsets = [0, 0], sizes = [1, 32], strides = [1, 1]} : vector<1x128xf32> to vector<1x32xf32>
    %100 = vector.extract_strided_slice %98 {offsets = [0, 32], sizes = [1, 32], strides = [1, 1]} : vector<1x128xf32> to vector<1x32xf32>
    %101 = vector.extract_strided_slice %98 {offsets = [0, 64], sizes = [1, 32], strides = [1, 1]} : vector<1x128xf32> to vector<1x32xf32>
    %102 = vector.extract_strided_slice %98 {offsets = [0, 96], sizes = [1, 32], strides = [1, 1]} : vector<1x128xf32> to vector<1x32xf32>
    %103 = arith.mulf %100, %86 : vector<1x32xf32>
    %104 = arith.mulf %99, %101 : vector<1x32xf32>
    %105 = arith.addf %103, %104 : vector<1x32xf32>
    %106 = math.tanh %105 : vector<1x32xf32>
    %107 = arith.mulf %102, %106 : vector<1x32xf32>
    %108 = vector.extract_strided_slice %29 {offsets = [4, 0], sizes = [1, 128], strides = [1, 1]} : vector<8x128xf32> to vector<1x128xf32>
    %cst_19 = arith.constant dense<0.000000e+00> : vector<1x128xf32>
    %109 = tpu.matmul %107, %30, %cst_19 {dimension_numbers = #tpu.dot_dimension_numbers<[1], [0], [0], [1], [0, 0, 1, 1], [], []>} : vector<1x32xf32>, vector<32x128xf32>, vector<1x128xf32> -> vector<1x128xf32>
    %110 = arith.addf %108, %109 : vector<1x128xf32>
    %111 = math.tanh %110 : vector<1x128xf32>
    %112 = arith.negf %110 : vector<1x128xf32>
    %113 = math.exp %112 : vector<1x128xf32>
    %cst_20 = arith.constant 1.000000e+00 : f32
    %114 = vector.broadcast %cst_20 : f32 to vector<1x128xf32>
    %115 = arith.addf %114, %113 : vector<1x128xf32>
    %116 = arith.divf %114, %115 : vector<1x128xf32>
    %117 = arith.select %36, %111, %116 : vector<1x128xi1>, vector<1x128xf32>
    %118 = vector.extract_strided_slice %117 {offsets = [0, 0], sizes = [1, 32], strides = [1, 1]} : vector<1x128xf32> to vector<1x32xf32>
    %119 = vector.extract_strided_slice %117 {offsets = [0, 32], sizes = [1, 32], strides = [1, 1]} : vector<1x128xf32> to vector<1x32xf32>
    %120 = vector.extract_strided_slice %117 {offsets = [0, 64], sizes = [1, 32], strides = [1, 1]} : vector<1x128xf32> to vector<1x32xf32>
    %121 = vector.extract_strided_slice %117 {offsets = [0, 96], sizes = [1, 32], strides = [1, 1]} : vector<1x128xf32> to vector<1x32xf32>
    %122 = arith.mulf %119, %105 : vector<1x32xf32>
    %123 = arith.mulf %118, %120 : vector<1x32xf32>
    %124 = arith.addf %122, %123 : vector<1x32xf32>
    %125 = math.tanh %124 : vector<1x32xf32>
    %126 = arith.mulf %121, %125 : vector<1x32xf32>
    %127 = vector.extract_strided_slice %29 {offsets = [5, 0], sizes = [1, 128], strides = [1, 1]} : vector<8x128xf32> to vector<1x128xf32>
    %cst_21 = arith.constant dense<0.000000e+00> : vector<1x128xf32>
    %128 = tpu.matmul %126, %30, %cst_21 {dimension_numbers = #tpu.dot_dimension_numbers<[1], [0], [0], [1], [0, 0, 1, 1], [], []>} : vector<1x32xf32>, vector<32x128xf32>, vector<1x128xf32> -> vector<1x128xf32>
    %129 = arith.addf %127, %128 : vector<1x128xf32>
    %130 = math.tanh %129 : vector<1x128xf32>
    %131 = arith.negf %129 : vector<1x128xf32>
    %132 = math.exp %131 : vector<1x128xf32>
    %cst_22 = arith.constant 1.000000e+00 : f32
    %133 = vector.broadcast %cst_22 : f32 to vector<1x128xf32>
    %134 = arith.addf %133, %132 : vector<1x128xf32>
    %135 = arith.divf %133, %134 : vector<1x128xf32>
    %136 = arith.select %36, %130, %135 : vector<1x128xi1>, vector<1x128xf32>
    %137 = vector.extract_strided_slice %136 {offsets = [0, 0], sizes = [1, 32], strides = [1, 1]} : vector<1x128xf32> to vector<1x32xf32>
    %138 = vector.extract_strided_slice %136 {offsets = [0, 32], sizes = [1, 32], strides = [1, 1]} : vector<1x128xf32> to vector<1x32xf32>
    %139 = vector.extract_strided_slice %136 {offsets = [0, 64], sizes = [1, 32], strides = [1, 1]} : vector<1x128xf32> to vector<1x32xf32>
    %140 = vector.extract_strided_slice %136 {offsets = [0, 96], sizes = [1, 32], strides = [1, 1]} : vector<1x128xf32> to vector<1x32xf32>
    %141 = arith.mulf %138, %124 : vector<1x32xf32>
    %142 = arith.mulf %137, %139 : vector<1x32xf32>
    %143 = arith.addf %141, %142 : vector<1x32xf32>
    %144 = math.tanh %143 : vector<1x32xf32>
    %145 = arith.mulf %140, %144 : vector<1x32xf32>
    %146 = vector.extract_strided_slice %29 {offsets = [6, 0], sizes = [1, 128], strides = [1, 1]} : vector<8x128xf32> to vector<1x128xf32>
    %cst_23 = arith.constant dense<0.000000e+00> : vector<1x128xf32>
    %147 = tpu.matmul %145, %30, %cst_23 {dimension_numbers = #tpu.dot_dimension_numbers<[1], [0], [0], [1], [0, 0, 1, 1], [], []>} : vector<1x32xf32>, vector<32x128xf32>, vector<1x128xf32> -> vector<1x128xf32>
    %148 = arith.addf %146, %147 : vector<1x128xf32>
    %149 = math.tanh %148 : vector<1x128xf32>
    %150 = arith.negf %148 : vector<1x128xf32>
    %151 = math.exp %150 : vector<1x128xf32>
    %cst_24 = arith.constant 1.000000e+00 : f32
    %152 = vector.broadcast %cst_24 : f32 to vector<1x128xf32>
    %153 = arith.addf %152, %151 : vector<1x128xf32>
    %154 = arith.divf %152, %153 : vector<1x128xf32>
    %155 = arith.select %36, %149, %154 : vector<1x128xi1>, vector<1x128xf32>
    %156 = vector.extract_strided_slice %155 {offsets = [0, 0], sizes = [1, 32], strides = [1, 1]} : vector<1x128xf32> to vector<1x32xf32>
    %157 = vector.extract_strided_slice %155 {offsets = [0, 32], sizes = [1, 32], strides = [1, 1]} : vector<1x128xf32> to vector<1x32xf32>
    %158 = vector.extract_strided_slice %155 {offsets = [0, 64], sizes = [1, 32], strides = [1, 1]} : vector<1x128xf32> to vector<1x32xf32>
    %159 = vector.extract_strided_slice %155 {offsets = [0, 96], sizes = [1, 32], strides = [1, 1]} : vector<1x128xf32> to vector<1x32xf32>
    %160 = arith.mulf %157, %143 : vector<1x32xf32>
    %161 = arith.mulf %156, %158 : vector<1x32xf32>
    %162 = arith.addf %160, %161 : vector<1x32xf32>
    %163 = math.tanh %162 : vector<1x32xf32>
    %164 = arith.mulf %159, %163 : vector<1x32xf32>
    %165 = vector.extract_strided_slice %29 {offsets = [7, 0], sizes = [1, 128], strides = [1, 1]} : vector<8x128xf32> to vector<1x128xf32>
    %cst_25 = arith.constant dense<0.000000e+00> : vector<1x128xf32>
    %166 = tpu.matmul %164, %30, %cst_25 {dimension_numbers = #tpu.dot_dimension_numbers<[1], [0], [0], [1], [0, 0, 1, 1], [], []>} : vector<1x32xf32>, vector<32x128xf32>, vector<1x128xf32> -> vector<1x128xf32>
    %167 = arith.addf %165, %166 : vector<1x128xf32>
    %168 = math.tanh %167 : vector<1x128xf32>
    %169 = arith.negf %167 : vector<1x128xf32>
    %170 = math.exp %169 : vector<1x128xf32>
    %cst_26 = arith.constant 1.000000e+00 : f32
    %171 = vector.broadcast %cst_26 : f32 to vector<1x128xf32>
    %172 = arith.addf %171, %170 : vector<1x128xf32>
    %173 = arith.divf %171, %172 : vector<1x128xf32>
    %174 = arith.select %36, %168, %173 : vector<1x128xi1>, vector<1x128xf32>
    %175 = vector.extract_strided_slice %174 {offsets = [0, 0], sizes = [1, 32], strides = [1, 1]} : vector<1x128xf32> to vector<1x32xf32>
    %176 = vector.extract_strided_slice %174 {offsets = [0, 32], sizes = [1, 32], strides = [1, 1]} : vector<1x128xf32> to vector<1x32xf32>
    %177 = vector.extract_strided_slice %174 {offsets = [0, 64], sizes = [1, 32], strides = [1, 1]} : vector<1x128xf32> to vector<1x32xf32>
    %178 = vector.extract_strided_slice %174 {offsets = [0, 96], sizes = [1, 32], strides = [1, 1]} : vector<1x128xf32> to vector<1x32xf32>
    %179 = arith.mulf %176, %162 : vector<1x32xf32>
    %180 = arith.mulf %175, %177 : vector<1x32xf32>
    %181 = arith.addf %179, %180 : vector<1x32xf32>
    %182 = math.tanh %181 : vector<1x32xf32>
    %183 = arith.mulf %178, %182 : vector<1x32xf32>
    %c64 = arith.constant 64 : index
    %c0_27 = arith.constant 0 : index
    %184 = vector.load %arg2[%c64, %c0_27] : memref<168x128xf32, #tpu.memory_space<vmem>>, vector<32x128xf32>
    %c161 = arith.constant 161 : index
    %c0_28 = arith.constant 0 : index
    %185 = vector.load %arg2[%c161, %c0_28] : memref<168x128xf32, #tpu.memory_space<vmem>>, vector<1x128xf32>
    %cst_29 = arith.constant dense<0.000000e+00> : vector<1x128xf32>
    %186 = tpu.matmul %23, %184, %cst_29 {dimension_numbers = #tpu.dot_dimension_numbers<[1], [0], [0], [1], [0, 0, 1, 1], [], []>} : vector<1x32xf32>, vector<32x128xf32>, vector<1x128xf32> -> vector<1x128xf32>
    %187 = arith.addf %186, %185 : vector<1x128xf32>
    %188 = math.tanh %187 : vector<1x128xf32>
    %189 = arith.negf %187 : vector<1x128xf32>
    %190 = math.exp %189 : vector<1x128xf32>
    %cst_30 = arith.constant 1.000000e+00 : f32
    %191 = vector.broadcast %cst_30 : f32 to vector<1x128xf32>
    %192 = arith.addf %191, %190 : vector<1x128xf32>
    %193 = arith.divf %191, %192 : vector<1x128xf32>
    %194 = arith.select %36, %188, %193 : vector<1x128xi1>, vector<1x128xf32>
    %195 = vector.extract_strided_slice %194 {offsets = [0, 0], sizes = [1, 32], strides = [1, 1]} : vector<1x128xf32> to vector<1x32xf32>
    %196 = vector.extract_strided_slice %194 {offsets = [0, 64], sizes = [1, 32], strides = [1, 1]} : vector<1x128xf32> to vector<1x32xf32>
    %197 = vector.extract_strided_slice %194 {offsets = [0, 96], sizes = [1, 32], strides = [1, 1]} : vector<1x128xf32> to vector<1x32xf32>
    %198 = arith.mulf %195, %196 : vector<1x32xf32>
    %199 = math.tanh %198 : vector<1x32xf32>
    %200 = arith.mulf %197, %199 : vector<1x32xf32>
    %c96 = arith.constant 96 : index
    %c0_31 = arith.constant 0 : index
    %201 = vector.load %arg2[%c96, %c0_31] : memref<168x128xf32, #tpu.memory_space<vmem>>, vector<32x128xf32>
    %c128 = arith.constant 128 : index
    %c0_32 = arith.constant 0 : index
    %202 = vector.load %arg2[%c128, %c0_32] : memref<168x128xf32, #tpu.memory_space<vmem>>, vector<32x128xf32>
    %c162 = arith.constant 162 : index
    %c0_33 = arith.constant 0 : index
    %203 = vector.load %arg2[%c162, %c0_33] : memref<168x128xf32, #tpu.memory_space<vmem>>, vector<1x128xf32>
    %cst_34 = arith.constant dense<0.000000e+00> : vector<1x128xf32>
    %204 = tpu.matmul %183, %201, %cst_34 {dimension_numbers = #tpu.dot_dimension_numbers<[1], [0], [0], [1], [0, 0, 1, 1], [], []>} : vector<1x32xf32>, vector<32x128xf32>, vector<1x128xf32> -> vector<1x128xf32>
    %cst_35 = arith.constant dense<0.000000e+00> : vector<1x128xf32>
    %205 = tpu.matmul %200, %202, %cst_35 {dimension_numbers = #tpu.dot_dimension_numbers<[1], [0], [0], [1], [0, 0, 1, 1], [], []>} : vector<1x32xf32>, vector<32x128xf32>, vector<1x128xf32> -> vector<1x128xf32>
    %206 = arith.addf %204, %205 : vector<1x128xf32>
    %207 = arith.addf %206, %203 : vector<1x128xf32>
    %208 = vector.extract_strided_slice %207 {offsets = [0, 0], sizes = [1, 4], strides = [1, 1]} : vector<1x128xf32> to vector<1x4xf32>
    %cst_36 = arith.constant dense<0xFF800000> : vector<1xf32>
    %209 = vector.multi_reduction <maximumf>, %208, %cst_36 [1] : vector<1x4xf32> to vector<1xf32>
    %210 = vector.shape_cast %209 : vector<1xf32> to vector<1x1xf32>
    %211 = vector.broadcast %210 : vector<1x1xf32> to vector<1x4xf32>
    %212 = arith.subf %208, %211 : vector<1x4xf32>
    %213 = math.exp %212 : vector<1x4xf32>
    %cst_37 = arith.constant dense<0.000000e+00> : vector<1xf32>
    %214 = vector.multi_reduction <add>, %213, %cst_37 [1] : vector<1x4xf32> to vector<1xf32>
    %215 = vector.shape_cast %214 : vector<1xf32> to vector<1x1xf32>
    %216 = vector.broadcast %215 : vector<1x1xf32> to vector<1x4xf32>
    %217 = arith.divf %213, %216 : vector<1x4xf32>
    %c0_38 = arith.constant 0 : index
    %c0_39 = arith.constant 0 : index
    %218 = vector.load %arg3[%c0_38, %c0_39] : memref<1x4xf32, #tpu.memory_space<vmem>>, vector<1x4xf32>
    tpu.vector_store %arg3[%c0_38, %c0_39], %217 {strides = array<i32>} : memref<1x4xf32, #tpu.memory_space<vmem>>, vector<1x4xf32>,
    return
  }
}

</mosaic_0001>

<bundles_post_ra>
// kernel: bilstm_classifier_forward.1
= control target key start
LH: loop header
LB: loop body
LE: loop exit
PB: predicated region body
PF: predicated region fallthrough
CT: control target
= control target key end

     0   :  { %s1868_s0 = inlined_call_operand.vmem [shape: s32[8], index: 0, kind: input, shape index: {}]   ;;  %s1869_s1 = inlined_call_operand.vmem [shape: f32[50,32], index: 1, kind: input, shape index: {}]   ;;  %s1870_s2 = inlined_call_operand.hbm [shape: f32[168,128], index: 2, kind: input, shape index: {}]   ;;  %s1871_s3 = inlined_call_operand.hbm [shape: f32[1,4], index: 3, kind: output, shape index: {}]  }
   0x1   :  { %s8_s14 = sshll.u32 %s1868_s0, 4  ;;  %s9_s14 = int_to_ptr.vmem [resolvable:$true] %s8_s14 }
   0x2   :  { %s1543_s15 = scalar_lea.vmem %s9_s14, 16  ;;  %p1548_p1 = scmp.lt.s32.totalorder %s9_s14, %s9_s14 }
   0x3   :  { %p1544_p0 = scmp.ne.s32.totalorder %s9_s14, %s1543_s15  ;;  %p1549_p2 = scmp.lt.s32.totalorder %s1543_s15, %s1543_s15 }
   0x5   :  { %p1550_p3 = por %p1549_p2, %p1548_p1 }
   0x7   :  { %p1551_p4 = pnand %p1550_p3, %p1544_p0 }
   0x9   :  { %1554 = shalt.err (!%p1551_p4)  }
   0xa   :  { %s1601_s16 = smov [#allocation3]  }
   0xb   :  { %11 = dma.vmem_to_smem %s9_s14, 16, %s1601_s16, [#allocation2] }
   0xc   :  { %1595 = dma.done.wait [#allocation2], 16 }
   0xd   :  { %1596 = vsyncadd [#allocation2], 4294967280 }
   0xe   :  { %13 = sfence }
   0xf   :  { %14 = vsyncpa [#allocation5], 0 }
  0x10   :  { %15 = vsyncpa [#allocation6], 0  ;;  %s1602_s17 = smov [#allocation4]  }
  0x11   :  { %s23_s18 = sshll.u32 %s1602_s17, 4  ;;  %s24_s18 = int_to_ptr.vmem [resolvable:$true] %s23_s18 }
  0x12   :  { %s1563_s19 = scalar_lea.vmem %s24_s18, 2688  ;;  %p1568_p6 = scmp.lt.s32.totalorder %s24_s18, %s24_s18 }
  0x13   :  { %p1564_p5 = scmp.ne.s32.totalorder %s24_s18, %s1563_s19  ;;  %p1569_p7 = scmp.lt.s32.totalorder %s1563_s19, %s1563_s19 }
  0x15   :  { %p1570_p8 = por %p1569_p7, %p1568_p6 }
  0x17   :  { %p1571_p9 = pnand %p1570_p8, %p1564_p5 }
  0x19   :  { %1574 = shalt.err (!%p1571_p9)
}
  0x1a   :  { %s1603_s0 = smov 128   ;;  %s1604_s20 = smov 8  }
  0x1b   :  { %29 = dma.hbm_to_vmem [thread:$0]  %s1870_s2, 2688, %s24_s18, [#allocation5], %s1603_s0, %s1603_s0, %s1604_s20  }
  0x1c   :  { %1597 = dma.done.wait [#allocation5], 2688  }
  0x1d   :  { %1598 = vsyncadd [#allocation5], 4294964608  ;;  %v1605_v0 = vmov 0.0   ;;  %vm1606_vm0 = vmmov 0   ;;  %s33_s23 = sld [smem:[#allocation3]]  ;;  %v95_v1 = vld [vmem:[#allocation4 + $0x18] sm:$0xff]  ;;  %v179_v34 = vlaneseq }
  0x1e   :  { %1336 = vmatprep.subr.mxu0 %v1605_v0  ;;  %1344 = vmatprep.mubr.msk.f32.mxu0 %vm1606_vm0, %v1605_v0  ;;  %s1253_s24 = sld [smem:[#allocation3 + $0x1]]  ;;  %v94_v2 = vld [vmem:[#allocation4 + $0x10] sm:$0xff]  ;;  %v93_v3 = vld [vmem:[#allocation4 + $0x8] sm:$0xff]  ;;  %vm78_vm1 = vcmask 1040384   ;;  %vm80_vm2 = vcmask 1041408   ;;  %v92_v8 = vld [vmem:[#allocation4] sm:$0xff] }
  0x1f   :  { %1347 = vmatprep.subr.mxu1 %v1605_v0  ;;  %1355 = vmatprep.mubr.msk.f32.mxu1 %vm1606_vm0, %v1605_v0  ;;  %s1254_s25 = sld [smem:[#allocation3 + $0x2]]  ;;  %vm82_vm3 = vcmask 1042432   ;;  %vm84_vm4 = vcmask 1043456   ;;  %vm86_vm5 = vcmask 1044480   ;;  %vm88_vm6 = vcmask 1045504   ;;  %v1700_v42 = vld [vmem:[#allocation4 + $0x38] sm:$0xff] }
  0x20   :  { %s1255_s26 = sld [smem:[#allocation3 + $0x3]]  ;;  %1337 = vmatpush3.msra.mxu0 %v95_v1  ;;  %vm90_vm7 = vcmask 1046528   ;;  %vm101_vm8 = vcmask 261120   ;;  %v1260_v27 = vld [vmem:[#allocation4 + $0xa0] ss:$0 sm:$0xff]  ;;  %v180_v35 = vand.u32 127, %v179_v34  ;;  %1348 = vmatpush3.msra.mxu1 %v1700_v42 }
  0x21   :  { %s1256_s27 = sld [smem:[#allocation3 + $0x4]]  ;;  %1338 = vmatprep.subr.mxu0 %v1605_v0  ;;  %v1702_v43 = vld [vmem:[#allocation4 + $0x30] sm:$0xff]  ;;  %1349 = vmatprep.subr.mxu1 %v1605_v0  ;;  %v1707_v44 = vld [vmem:[#allocation4 + $0x28] sm:$0xff]  ;;  %v1713_v45 = vld [vmem:[#allocation4 + $0x20] sm:$0xff]  ;;  %vm1217_vm12 = vcmask 24576  }
  0x22   :  { %s1643_s2 = sld [smem:[#allocation3 + $0x5]]  ;;  %1339 = vmatpush3.msra.mxu0 %v94_v2  ;;  %vm181_vm9 = vcmp.ge.s32.totalorder %v180_v35, 64  ;;  %vm182_vm10 = vcmp.lt.s32.totalorder %v180_v35, 96  ;;  %1350 = vmatpush3.msra.mxu1 %v1702_v43 }
  0x23   :  { %s34_s30 = scalar_lea.vmem %s1869_s1, %s33_s23  ;;  %s1648_s4 = sld [smem:[#allocation3 + $0x6]]  ;;  %1340 = vmatprep.subr.mxu0 %v1605_v0  ;;  %vm1693_vm11 = vmand %vm181_vm9, %vm182_vm10  ;;  %1351 = vmatprep.subr.mxu1 %v1605_v0 }
  0x24   :  { %s37_s7 = scalar_lea.vmem %s1869_s1, %s1253_s24  ;;  %s1653_s8 = sld [smem:[#allocation3 + $0x7]]  ;;  %v35_v4 = vld [vmem:[%s34_s30] sm:$0x1]  ;;  %1341 = vmatpush3.msra.mxu0 %v93_v3  ;;  %1352 = vmatpush3.msra.mxu1 %v1707_v44 }
  0x25   :  { %v38_v5 = vld [vmem:[%s37_s7] sm:$0x1]  ;;  %s40_s11 = scalar_lea.vmem %s1869_s1, %s1254_s25  ;;  %1342 = vmatprep.subr.mxu0 %v1605_v0  ;;  %1353 = vmatprep.subr.mxu1 %v1605_v0 }
  0x26   :  { %v41_v6 = vld [vmem:[%s40_s11] sm:$0x1]  ;;  %s43_s14 = scalar_lea.vmem %s1869_s1, %s1255_s26  ;;  %v58_v7 = vrot.slane %v38_v5, 7  ;;  %1343 = vmatpush3.msra.mxu0 %v92_v8  ;;  %1354 = vmatpush3.msra.mxu1 %v1713_v45  ;;  %s1608_s26 = smov 96  }
  0x27   :  { %v44_v9 = vld [vmem:[%s43_s14] sm:$0x1]  ;;  %s46_s17 = scalar_lea.vmem %s1869_s1, %s1256_s27  ;;  %v61_v10 = vrot.slane %v41_v6, 6  ;;  %1358 = vmatprep.subr.mxu0 %v1605_v0  ;;  %1369 = vmatprep.subr.mxu1 %v1605_v0  ;;  %s1609_s27 = smov 32  }
  0x28   :  { %v47_v11 = vld [vmem:[%s46_s17] sm:$0x1]  ;;  %s49_s0 = scalar_lea.vmem %s1869_s1, %s1643_s2  ;;  %v64_v12 = vrot.slane %v44_v9, 5  ;;  %v79_v13 = vsel %vm78_vm1, %v35_v4, %v58_v7  ;;  %s1610_s2 = smov [#allocation7]  }
  0x29   :  { %v50_v14 = vld [vmem:[%s49_s0] sm:$0x1]  ;;  %s52_s22 = scalar_lea.vmem %s1869_s1, %s1648_s4  ;;  %v67_v15 = vrot.slane %v47_v11, 4  ;;  %v81_v16 = vsel %vm80_vm2, %v79_v13, %v61_v10  ;;  %s1236_s28 = sshll.u32 %s1610_s2, 4  ;;  %s1237_s28 = int_to_ptr.vmem [resolvable:$true] %s1236_s28 }
  0x2a   :  { %v53_v17 = vld [vmem:[%s52_s22] sm:$0x1]  ;;  %s55_s25 = scalar_lea.vmem %s1869_s1, %s1653_s8  ;;  %v70_v18 = vrot.slane %v50_v14, 3  ;;  %v83_v19 = vsel %vm82_vm3, %v81_v16, %v64_v12  ;;  %s1607_s1 = smov 64  }
  0x2b   :  { %v1682_v20 = vld [vmem:[%s55_s25] sm:$0x1]  ;;  %v73_v21 = vrot.slane %v53_v17, 2  ;;  %v85_v22 = vsel %vm84_vm4, %v83_v19, %v67_v15  ;;  %s1575_s29 = scalar_lea.vmem %s1237_s28, 16  ;;  %s1579_s30 = scalar_lea.vmem %s1237_s28, 32 }
  0x2c   :  { %v76_v23 = vrot.slane %v1682_v20, 1  ;;  %v87_v24 = vsel %vm86_vm5, %v85_v22, %v70_v18  ;;  %p1576_p10 = scmp.ne.s32.totalorder %s1237_s28, %s1575_s29  ;;  %p1580_p11 = scmp.lt.s32.totalorder %s1237_s28, %s1237_s28 }
  0x2d   :  { %v89_v25 = vsel %vm88_vm6, %v87_v24, %v73_v21  ;;  %p1581_p12 = scmp.lt.s32.totalorder %s1579_s30, %s1575_s29 }
  0x2e   :  { %v91_v26 = vsel %vm90_vm7, %v89_v25, %v76_v23 }
  0x2f   :  { %1345 = vmatmul.mubr.msk.f32.vlgmr.msra.gmra.mxu0 %vm101_vm8, %v91_v26  ;;  %p1582_p13 = por %p1581_p12, %p1580_p11 }
  0x30   :  { %1366 = vmatprep.mubr.msk.f32.mxu0 %vm1606_vm0, %v1605_v0  ;;  %1359 = vmatpush3.msra.mxu0 %v1700_v42 }
  0x31   :  { %1360 = vmatprep.subr.mxu0 %v1605_v0  ;;  %p1583_p0 = pnand %p1582_p13, %p1576_p10 }
  0x32   :  { %1361 = vmatpush3.msra.mxu0 %v1702_v43 }
  0x33   :  { %1362 = vmatprep.subr.mxu0 %v1605_v0 }
  0x34   :  { %1363 = vmatpush3.msra.mxu0 %v1707_v44 }
  0x35   :  { %1364 = vmatprep.subr.mxu0 %v1605_v0 }
  0x36   :  { %1365 = vmatpush3.msra.mxu0 %v1713_v45 }
  0x37   :  { %1380 = vmatprep.subr.mxu0 %v1605_v0 }
  0xef   :  { %v171_v28 = vpop.f32.mrf.mxu0 }
  0xf0   :  { %v1689_v29 = vadd.f32 %v1260_v27, %v171_v28 }
  0xf1   :  { %v1346_v30 = vpop.f32.mrf.mxu0 }
  0xf2   :  { %v1262_v31 = vmul.f32 -1.442695, %v1689_v29 }
  0xf4   :  { %1467 = vpow2.f32 %v1262_v31 }
  0xf5   :  { %1469 = vtanh.f32 %v1689_v29 }
 0x101   :  { %v1468_v32 = vpop.eup %1467 }
 0x102   :  { %v188_v33 = vadd.f32 1.0, %v1468_v32  ;;  %v1470_v37 = vpop.eup %1469 }
 0x104   :  { %1471 = vrcp.f32 %v188_v33 }
 0x111   :  { %v1472_v38 = vpop.eup %1471 }
 0x112   :  { %v191_v39 = vsel %vm1693_vm11, %v1470_v37, %v1472_v38 }
 0x113   :  { %193 = vrot.lane.b32.xlu0 %v191_v39, %s1607_s1 }
 0x185   :  { %v194_v40 = vpop.permute.xlu0 %193 }
 0x186   :  { %v196_v41 = vmul.f32 %v194_v40, %v191_v39 }
 0x188   :  { %1473 = vtanh.f32 %v196_v41  ;;  %v291_v47 = vrot.slane %v196_v41, 7 }
 0x195   :  { %v1474_v46 = vpop.eup %1473 }
 0x196   :  { %199 = vrot.lane.b32.xlu0 %v1474_v46, %s1608_s26 }
 0x19a   :  { %292 = vrot.lane.b32.xlu0 %v291_v47, %s1609_s27 }
 0x208   :  { %v200_v48 = vpop.permute.xlu0 %199 }
 0x209   :  { %v202_v49 = vmul.f32 %v200_v48, %v191_v39 }
 0x20b   :  { %204 = vrot.lane.b32.xlu1 %v202_v49, %s1609_s27 }
 0x20c   :  { %v293_v63 = vpop.permute.xlu0 %292 }
 0x27d   :  { %v205_v50 = vpop.permute.xlu1 %204 }
 0x27e   :  { %1356 = vmatmul.mubr.msk.f32.vlgmr.msra.gmra.mxu1 %vm101_vm8, %v205_v50 }
 0x27f   :  { %1370 = vmatpush3.msra.mxu1 %v1700_v42  ;;  %1377 = vmatprep.mubr.msk.f32.mxu1 %vm1606_vm0, %v1605_v0 }
 0x280   :  { %1371 = vmatprep.subr.mxu1 %v1605_v0 }
 0x281   :  { %1372 = vmatpush3.msra.mxu1 %v1702_v43 }
 0x282   :  { %1373 = vmatprep.subr.mxu1 %v1605_v0 }
 0x283   :  { %1374 = vmatpush3.msra.mxu1 %v1707_v44 }
 0x284   :  { %1375 = vmatprep.subr.mxu1 %v1605_v0 }
 0x285   :  { %1376 = vmatpush3.msra.mxu1 %v1713_v45 }
 0x286   :  { %1391 = vmatprep.subr.mxu1 %v1605_v0 }
 0x33e   :  { %v274_v51 = vpop.f32.mrf.mxu1 }
 0x33f   :  { %v279_v52 = vrot.slane %v274_v51, 7 }
 0x340   :  { %v1357_v53 = vpop.f32.mrf.mxu1 }
 0x341   :  { %v281_v54 = vadd.f32 %v279_v52, %v1689_v29 }
 0x343   :  { %v1264_v55 = vmul.f32 -1.442695, %v281_v54 }
 0x345   :  { %1475 = vpow2.f32 %v1264_v55 }
 0x346   :  { %1477 = vtanh.f32 %v281_v54 }
 0x352   :  { %v1476_v56 = vpop.eup %1475 }
 0x353   :  { %v286_v57 = vadd.f32 1.0, %v1476_v56  ;;  %v1478_v58 = vpop.eup %1477 }
 0x355   :  { %1479 = vrcp.f32 %v286_v57 }
 0x362   :  { %v1480_v59 = vpop.eup %1479 }
 0x363   :  { %v289_v60 = vsel %vm1693_vm11, %v1478_v58, %v1480_v59 }
 0x364   :  { %297 = vrot.lane.b32.xlu1 %v289_v60, %s1607_s1  ;;  %v295_v1 = vmul.f32 %v293_v63, %v289_v60 }
 0x3d6   :  { %v298_v61 = vpop.permute.xlu1 %297 }
 0x3d7   :  { %v300_v62 = vmul.f32 %v298_v61, %v289_v60 }
 0x3d9   :  { %302 = vrot.lane.b32.xlu1 %v300_v62, %s1609_s27 }
 0x44b   :  { %v303_v2 = vpop.permute.xlu1 %302 }
 0x44c   :  { %v305_v3 = vadd.f32 %v303_v2, %v295_v1 }
 0x44e   :  { %1481 = vtanh.f32 %v305_v3  ;;  %v401_v22 = vrot.slane %v305_v3, 7 }
 0x45b   :  { %v1482_v4 = vpop.eup %1481 }
 0x45c   :  { %308 = vrot.lane.b32.xlu0 %v1482_v4, %s1607_s1 }
 0x4ce   :  { %v309_v5 = vpop.permute.xlu0 %308 }
 0x4cf   :  { %v311_v6 = vmul.f32 %v309_v5, %v289_v60 }
 0x4d1   :  { %v313_v7 = vrot.slane %v311_v6, 1 }
 0x4d3   :  { %314 = vrot.lane.b32.xlu1 %v313_v7, %s1609_s27 }
 0x545   :  { %v315_v8 = vpop.permute.xlu1 %314 }
 0x546   :  { %1367 = vmatmul.mubr.msk.f32.vlgmr.msra.gmra.mxu0 %vm101_vm8, %v315_v8 }
 0x547   :  { %1381 = vmatpush3.msra.mxu0 %v1700_v42  ;;  %1388 = vmatprep.mubr.msk.f32.mxu0 %vm1606_vm0, %v1605_v0 }
 0x548   :  { %1382 = vmatprep.subr.mxu0 %v1605_v0 }
 0x549   :  { %1383 = vmatpush3.msra.mxu0 %v1702_v43 }
 0x54a   :  { %1384 = vmatprep.subr.mxu0 %v1605_v0 }
 0x54b   :  { %1385 = vmatpush3.msra.mxu0 %v1707_v44 }
 0x54c   :  { %1386 = vmatprep.subr.mxu0 %v1605_v0 }
 0x54d   :  { %1387 = vmatpush3.msra.mxu0 %v1713_v45 }
 0x54e   :  { %1402 = vmatprep.subr.mxu0 %v1605_v0 }
 0x606   :  { %v384_v9 = vpop.f32.mrf.mxu0 }
 0x607   :  { %v389_v10 = vrot.slane %v384_v9, 6 }
 0x608   :  { %v1368_v11 = vpop.f32.mrf.mxu0 }
 0x609   :  { %v391_v12 = vadd.f32 %v389_v10, %v1689_v29 }
 0x60b   :  { %v1266_v13 = vmul.f32 -1.442695, %v391_v12 }
 0x60d   :  { %1483 = vpow2.f32 %v1266_v13 }
 0x60e   :  { %1485 = vtanh.f32 %v391_v12 }
 0x61a   :  { %v1484_v14 = vpop.eup %1483 }
 0x61b   :  { %v396_v15 = vadd.f32 1.0, %v1484_v14  ;;  %v1486_v16 = vpop.eup %1485 }
 0x61d   :  { %1487 = vrcp.f32 %v396_v15 }
 0x62a   :  { %v1488_v17 = vpop.eup %1487 }
 0x62b   :  { %v399_v18 = vsel %vm1693_vm11, %v1486_v16, %v1488_v17 }
 0x62c   :  { %405 = vrot.lane.b32.xlu0 %v399_v18, %s1607_s1  ;;  %v403_v23 = vmul.f32 %v401_v22, %v399_v18 }
 0x69e   :  { %v406_v19 = vpop.permute.xlu0 %405 }
 0x69f   :  { %v408_v21 = vmul.f32 %v406_v19, %v399_v18 }
 0x6a1   :  { %410 = vrot.lane.b32.xlu1 %v408_v21, %s1609_s27 }
 0x713   :  { %v411_v24 = vpop.permute.xlu1 %410 }
 0x714   :  { %v413_v25 = vadd.f32 %v411_v24, %v403_v23 }
 0x716   :  { %1489 = vtanh.f32 %v413_v25  ;;  %v509_v49 = vrot.slane %v413_v25, 7 }
 0x723   :  { %v1490_v26 = vpop.eup %1489 }
 0x724   :  { %416 = vrot.lane.b32.xlu0 %v1490_v26, %s1607_s1 }
 0x796   :  { %v417_v27 = vpop.permute.xlu0 %416 }
 0x797   :  { %v419_v28 = vmul.f32 %v417_v27, %v399_v18 }
 0x799   :  { %v421_v30 = vrot.slane %v419_v28, 2 }
 0x79b   :  { %422 = vrot.lane.b32.xlu1 %v421_v30, %s1609_s27 }
 0x80d   :  { %v423_v31 = vpop.permute.xlu1 %422 }
 0x80e   :  { %1378 = vmatmul.mubr.msk.f32.vlgmr.msra.gmra.mxu1 %vm101_vm8, %v423_v31 }
 0x80f   :  { %1392 = vmatpush3.msra.mxu1 %v1700_v42  ;;  %1399 = vmatprep.mubr.msk.f32.mxu1 %vm1606_vm0, %v1605_v0 }
 0x810   :  { %1393 = vmatprep.subr.mxu1 %v1605_v0 }
 0x811   :  { %1394 = vmatpush3.msra.mxu1 %v1702_v43 }
 0x812   :  { %1395 = vmatprep.subr.mxu1 %v1605_v0 }
 0x813   :  { %1396 = vmatpush3.msra.mxu1 %v1707_v44 }
 0x814   :  { %1397 = vmatprep.subr.mxu1 %v1605_v0 }
 0x815   :  { %1398 = vmatpush3.msra.mxu1 %v1713_v45 }
 0x816   :  { %1413 = vmatprep.subr.mxu1 %v1605_v0 }
 0x8ce   :  { %v492_v32 = vpop.f32.mrf.mxu1 }
 0x8cf   :  { %v497_v33 = vrot.slane %v492_v32, 5 }
 0x8d0   :  { %v1379_v34 = vpop.f32.mrf.mxu1 }
 0x8d1   :  { %v499_v35 = vadd.f32 %v497_v33, %v1689_v29 }
 0x8d3   :  { %v1268_v37 = vmul.f32 -1.442695, %v499_v35 }
 0x8d5   :  { %1491 = vpow2.f32 %v1268_v37 }
 0x8d6   :  { %1493 = vtanh.f32 %v499_v35 }
 0x8e2   :  { %v1492_v38 = vpop.eup %1491 }
 0x8e3   :  { %v504_v39 = vadd.f32 1.0, %v1492_v38  ;;  %v1494_v40 = vpop.eup %1493 }
 0x8e5   :  { %1495 = vrcp.f32 %v504_v39 }
 0x8f2   :  { %v1496_v41 = vpop.eup %1495 }
 0x8f3   :  { %v507_v46 = vsel %vm1693_vm11, %v1494_v40, %v1496_v41 }
 0x8f4   :  { %513 = vrot.lane.b32.xlu0 %v507_v46, %s1607_s1  ;;  %v511_v50 = vmul.f32 %v509_v49, %v507_v46 }
 0x966   :  { %v514_v47 = vpop.permute.xlu0 %513 }
 0x967   :  { %v516_v48 = vmul.f32 %v514_v47, %v507_v46 }
 0x969   :  { %518 = vrot.lane.b32.xlu1 %v516_v48, %s1609_s27 }
 0x9db   :  { %v519_v51 = vpop.permute.xlu1 %518 }
 0x9dc   :  { %v521_v52 = vadd.f32 %v519_v51, %v511_v50 }
 0x9de   :  { %1497 = vtanh.f32 %v521_v52  ;;  %v617_v7 = vrot.slane %v521_v52, 7 }
 0x9eb   :  { %v1498_v53 = vpop.eup %1497 }
 0x9ec   :  { %524 = vrot.lane.b32.xlu0 %v1498_v53, %s1607_s1 }
 0xa5e   :  { %v525_v54 = vpop.permute.xlu0 %524 }
 0xa5f   :  { %v527_v55 = vmul.f32 %v525_v54, %v507_v46 }
 0xa61   :  { %v529_v56 = vrot.slane %v527_v55, 3 }
 0xa63   :  { %530 = vrot.lane.b32.xlu1 %v529_v56, %s1609_s27  ;;  %v963_v56 = vld [vmem:[#allocation4 + $0x58] sm:$0xff] }
 0xad5   :  { %v531_v57 = vpop.permute.xlu1 %530 }
 0xad6   :  { %1389 = vmatmul.mubr.msk.f32.vlgmr.msra.gmra.mxu0 %vm101_vm8, %v531_v57 }
 0xad7   :  { %1403 = vmatpush3.msra.mxu0 %v1700_v42  ;;  %1410 = vmatprep.mubr.msk.f32.mxu0 %vm1606_vm0, %v1605_v0 }
 0xad8   :  { %1404 = vmatprep.subr.mxu0 %v1605_v0 }
 0xad9   :  { %1405 = vmatpush3.msra.mxu0 %v1702_v43 }
 0xada   :  { %1406 = vmatprep.subr.mxu0 %v1605_v0 }
 0xadb   :  { %1407 = vmatpush3.msra.mxu0 %v1707_v44 }
 0xadc   :  { %1408 = vmatprep.subr.mxu0 %v1605_v0 }
 0xadd   :  { %1409 = vmatpush3.msra.mxu0 %v1713_v45 }
 0xade   :  { %1424 = vmatprep.subr.mxu0 %v1605_v0 }
 0xb96   :  { %v600_v58 = vpop.f32.mrf.mxu0 }
 0xb97   :  { %v605_v59 = vrot.slane %v600_v58, 4  ;;  %v962_v58 = vld [vmem:[#allocation4 + $0x50] sm:$0xff] }
 0xb98   :  { %v1390_v60 = vpop.f32.mrf.mxu0 }
 0xb99   :  { %v607_v61 = vadd.f32 %v605_v59, %v1689_v29  ;;  %v961_v59 = vld [vmem:[#allocation4 + $0x48] sm:$0xff]  ;;  %v960_v60 = vld [vmem:[#allocation4 + $0x40] sm:$0xff] }
 0xb9b   :  { %v1270_v62 = vmul.f32 -1.442695, %v607_v61 }
 0xb9d   :  { %1499 = vpow2.f32 %v1270_v62 }
 0xb9e   :  { %1501 = vtanh.f32 %v607_v61 }
 0xbaa   :  { %v1500_v63 = vpop.eup %1499 }
 0xbab   :  { %v612_v1 = vadd.f32 1.0, %v1500_v63  ;;  %v1502_v2 = vpop.eup %1501 }
 0xbad   :  { %1503 = vrcp.f32 %v612_v1 }
 0xbba   :  { %v1504_v3 = vpop.eup %1503 }
 0xbbb   :  { %v615_v4 = vsel %vm1693_vm11, %v1502_v2, %v1504_v3 }
 0xbbc   :  { %621 = vrot.lane.b32.xlu0 %v615_v4, %s1607_s1  ;;  %v619_v8 = vmul.f32 %v617_v7, %v615_v4 }
 0xc2e   :  { %v622_v5 = vpop.permute.xlu0 %621 }
 0xc2f   :  { %v624_v6 = vmul.f32 %v622_v5, %v615_v4 }
 0xc31   :  { %626 = vrot.lane.b32.xlu1 %v624_v6, %s1609_s27 }
 0xca3   :  { %v627_v9 = vpop.permute.xlu1 %626 }
 0xca4   :  { %v629_v10 = vadd.f32 %v627_v9, %v619_v8 }
 0xca6   :  { %1505 = vtanh.f32 %v629_v10  ;;  %v725_v25 = vrot.slane %v629_v10, 7 }
 0xcb3   :  { %v1506_v11 = vpop.eup %1505 }
 0xcb4   :  { %632 = vrot.lane.b32.xlu0 %v1506_v11, %s1607_s1 }
 0xd26   :  { %v633_v12 = vpop.permute.xlu0 %632 }
 0xd27   :  { %v635_v13 = vmul.f32 %v633_v12, %v615_v4  ;;  %v964_v4 = vld [vmem:[#allocation4 + $0xa1] sm:$0x1] }
 0xd29   :  { %v637_v14 = vrot.slane %v635_v13, 4 }
 0xd2b   :  { %638 = vrot.lane.b32.xlu1 %v637_v14, %s1609_s27 }
 0xd9d   :  { %v639_v15 = vpop.permute.xlu1 %638 }
 0xd9e   :  { %1400 = vmatmul.mubr.msk.f32.vlgmr.msra.gmra.mxu1 %vm101_vm8, %v639_v15 }
 0xd9f   :  { %1414 = vmatpush3.msra.mxu1 %v1700_v42  ;;  %1421 = vmatprep.mubr.msk.f32.mxu1 %vm1606_vm0, %v1605_v0 }
 0xda0   :  { %1415 = vmatprep.subr.mxu1 %v1605_v0 }
 0xda1   :  { %1416 = vmatpush3.msra.mxu1 %v1702_v43 }
 0xda2   :  { %1417 = vmatprep.subr.mxu1 %v1605_v0 }
 0xda3   :  { %1418 = vmatpush3.msra.mxu1 %v1707_v44 }
 0xda4   :  { %1419 = vmatprep.subr.mxu1 %v1605_v0 }
 0xda5   :  { %1420 = vmatpush3.msra.mxu1 %v1713_v45 }
 0xda6   :  { %1435 = vmatprep.subr.mxu1 %v1605_v0 }
 0xe5e   :  { %v708_v16 = vpop.f32.mrf.mxu1 }
 0xe5f   :  { %v713_v17 = vrot.slane %v708_v16, 3 }
 0xe60   :  { %v1401_v42 = vpop.f32.mrf.mxu1 }
 0xe61   :  { %v715_v18 = vadd.f32 %v713_v17, %v1689_v29 }
 0xe63   :  { %v1272_v19 = vmul.f32 -1.442695, %v715_v18 }
 0xe65   :  { %1507 = vpow2.f32 %v1272_v19 }
 0xe66   :  { %1509 = vtanh.f32 %v715_v18 }
 0xe72   :  { %v1508_v21 = vpop.eup %1507 }
 0xe73   :  { %v720_v22 = vadd.f32 1.0, %v1508_v21  ;;  %v1510_v43 = vpop.eup %1509 }
 0xe75   :  { %1511 = vrcp.f32 %v720_v22 }
 0xe82   :  { %v1512_v23 = vpop.eup %1511 }
 0xe83   :  { %v723_v44 = vsel %vm1693_vm11, %v1510_v43, %v1512_v23  ;;  %v1063_v23 = vld [vmem:[#allocation4 + $0x98] sm:$0xff] }
 0xe84   :  { %729 = vrot.lane.b32.xlu0 %v723_v44, %s1607_s1  ;;  %v727_v26 = vmul.f32 %v725_v25, %v723_v44 }
 0xef6   :  { %v730_v45 = vpop.permute.xlu0 %729 }
 0xef7   :  { %v732_v24 = vmul.f32 %v730_v45, %v723_v44 }
 0xef9   :  { %734 = vrot.lane.b32.xlu1 %v732_v24, %s1609_s27 }
 0xf6b   :  { %v735_v27 = vpop.permute.xlu1 %734 }
 0xf6c   :  { %v737_v28 = vadd.f32 %v735_v27, %v727_v26  ;;  %v1061_v27 = vld [vmem:[#allocation4 + $0x88] sm:$0xff] }
 0xf6e   :  { %1513 = vtanh.f32 %v737_v28  ;;  %v833_v52 = vrot.slane %v737_v28, 7  ;;  %v1060_v28 = vld [vmem:[#allocation4 + $0x80] sm:$0xff] }
 0xf7b   :  { %v1514_v30 = vpop.eup %1513 }
 0xf7c   :  { %740 = vrot.lane.b32.xlu0 %v1514_v30, %s1607_s1  ;;  %v1059_v30 = vld [vmem:[#allocation4 + $0x78] sm:$0xff] }
 0xfee   :  { %v741_v31 = vpop.permute.xlu0 %740 }
 0xfef   :  { %v743_v32 = vmul.f32 %v741_v31, %v723_v44  ;;  %v1062_v44 = vld [vmem:[#allocation4 + $0x90] sm:$0xff] }
 0xff0   :  { %v1058_v31 = vld [vmem:[#allocation4 + $0x70] sm:$0xff] }
 0xff1   :  { %v745_v33 = vrot.slane %v743_v32, 5  ;;  %v1057_v32 = vld [vmem:[#allocation4 + $0x68] sm:$0xff] }
 0xff3   :  { %746 = vrot.lane.b32.xlu1 %v745_v33, %s1609_s27  ;;  %v1056_v33 = vld [vmem:[#allocation4 + $0x60] sm:$0xff] }
0x1065   :  { %v747_v34 = vpop.permute.xlu1 %746 }
0x1066   :  { %1411 = vmatmul.mubr.msk.f32.vlgmr.msra.gmra.mxu0 %vm101_vm8, %v747_v34 }
0x1067   :  { %1432 = vmatprep.mubr.msk.f32.mxu0 %vm1606_vm0, %v1605_v0  ;;  %1425 = vmatpush3.msra.mxu0 %v963_v56 }
0x1068   :  { %1426 = vmatprep.subr.mxu0 %v1605_v0 }
0x1069   :  { %1427 = vmatpush3.msra.mxu0 %v962_v58 }
0x106a   :  { %1428 = vmatprep.subr.mxu0 %v1605_v0 }
0x106b   :  { %1429 = vmatpush3.msra.mxu0 %v961_v59 }
0x106c   :  { %1430 = vmatprep.subr.mxu0 %v1605_v0 }
0x106d   :  { %1431 = vmatpush3.msra.mxu0 %v960_v60 }
0x106e   :  { %1433 = vmatmul.mubr.msk.f32.vlgmr.msra.gmra.mxu0 %vm101_vm8, %v1682_v20  ;;  %1446 = vmatprep.subr.mxu0 %v1605_v0 }
0x106f   :  { %1454 = vmatprep.mubr.msk.f32.mxu0 %vm1606_vm0, %v1605_v0  ;;  %1447 = vmatpush3.msra.mxu0 %v1059_v30 }
0x1070   :  { %1448 = vmatprep.subr.mxu0 %v1605_v0 }
0x1071   :  { %1449 = vmatpush3.msra.mxu0 %v1058_v31 }
0x1072   :  { %1450 = vmatprep.subr.mxu0 %v1605_v0 }
0x1073   :  { %1451 = vmatpush3.msra.mxu0 %v1057_v32 }
0x1074   :  { %1452 = vmatprep.subr.mxu0 %v1605_v0 }
0x1075   :  { %1453 = vmatpush3.msra.mxu0 %v1056_v33 }
0x1126   :  { %v816_v35 = vpop.f32.mrf.mxu0 }
0x1127   :  { %v821_v37 = vrot.slane %v816_v35, 2 }
0x1128   :  { %v1412_v38 = vpop.f32.mrf.mxu0 }
0x1129   :  { %v823_v39 = vadd.f32 %v821_v37, %v1689_v29 }
0x112b   :  { %v1274_v40 = vmul.f32 -1.442695, %v823_v39 }
0x112d   :  { %1515 = vpow2.f32 %v1274_v40 }
0x112e   :  { %1517 = vtanh.f32 %v823_v39  ;;  %v1033_v2 = vpop.f32.mrf.mxu0 }
0x112f   :  { %v1034_v20 = vadd.f32 %v1033_v2, %v964_v4 }
0x1130   :  { %v1434_v3 = vpop.f32.mrf.mxu0 }
0x1131   :  { %v1278_v5 = vmul.f32 -1.442695, %v1034_v20 }
0x113a   :  { %v1516_v41 = vpop.eup %1515 }
0x113b   :  { %v828_v46 = vadd.f32 1.0, %v1516_v41  ;;  %v1518_v47 = vpop.eup %1517 }
0x113d   :  { %1519 = vrcp.f32 %v828_v46 }
0x114a   :  { %v1520_v48 = vpop.eup %1519 }
0x114b   :  { %v831_v49 = vsel %vm1693_vm11, %v1518_v47, %v1520_v48 }
0x114c   :  { %837 = vrot.lane.b32.xlu0 %v831_v49, %s1607_s1  ;;  %v835_v53 = vmul.f32 %v833_v52, %v831_v49 }
0x11be   :  { %v838_v50 = vpop.permute.xlu0 %837 }
0x11bf   :  { %v840_v51 = vmul.f32 %v838_v50, %v831_v49 }
0x11c1   :  { %842 = vrot.lane.b32.xlu1 %v840_v51, %s1609_s27 }
0x1233   :  { %v843_v54 = vpop.permute.xlu1 %842 }
0x1234   :  { %v1825_v55 = vadd.f32 %v843_v54, %v835_v53 }
0x1236   :  { %1521 = vtanh.f32 %v1825_v55  ;;  %v941_v36 = vrot.slane %v1825_v55, 7 }
0x1237   :  { %1523 = vpow2.f32 %v1278_v5 }
0x1243   :  { %v1522_v57 = vpop.eup %1521 }
0x1244   :  { %848 = vrot.lane.b32.xlu0 %v1522_v57, %s1607_s1  ;;  %v1524_v11 = vpop.eup %1523 }
0x1245   :  { %v1041_v12 = vadd.f32 1.0, %v1524_v11 }
0x12b6   :  { %v849_v61 = vpop.permute.xlu0 %848 }
0x12b7   :  { %v851_v62 = vmul.f32 %v849_v61, %v831_v49  ;;  %v1064_v49 = vld [vmem:[#allocation4 + $0xa2] sm:$0x1] }
0x12b9   :  { %v853_v63 = vrot.slane %v851_v62, 6 }
0x12bb   :  { %854 = vrot.lane.b32.xlu1 %v853_v63, %s1609_s27 }
0x132d   :  { %v855_v1 = vpop.permute.xlu1 %854 }
0x132e   :  { %1422 = vmatmul.mubr.msk.f32.vlgmr.msra.gmra.mxu1 %vm101_vm8, %v855_v1 }
0x132f   :  { %1443 = vmatprep.mubr.msk.f32.mxu1 %vm1606_vm0, %v1605_v0  ;;  %1436 = vmatpush3.msra.mxu1 %v1063_v23 }
0x1330   :  { %1437 = vmatprep.subr.mxu1 %v1605_v0 }
0x1331   :  { %1438 = vmatpush3.msra.mxu1 %v1062_v44 }
0x1332   :  { %1439 = vmatprep.subr.mxu1 %v1605_v0 }
0x1333   :  { %1440 = vmatpush3.msra.mxu1 %v1061_v27 }
0x1334   :  { %1441 = vmatprep.subr.mxu1 %v1605_v0 }
0x1335   :  { %1442 = vmatpush3.msra.mxu1 %v1060_v28 }
0x13ee   :  { %v924_v6 = vpop.f32.mrf.mxu1 }
0x13ef   :  { %v929_v7 = vrot.slane %v924_v6, 1 }
0x13f0   :  { %v1423_v8 = vpop.f32.mrf.mxu1 }
0x13f1   :  { %v931_v9 = vadd.f32 %v929_v7, %v1689_v29 }
0x13f3   :  { %v1276_v10 = vmul.f32 -1.442695, %v931_v9 }
0x13f5   :  { %1525 = vpow2.f32 %v1276_v10 }
0x13f6   :  { %1527 = vtanh.f32 %v1034_v20 }
0x13f7   :  { %1529 = vrcp.f32 %v1041_v12 }
0x13f8   :  { %1531 = vtanh.f32 %v931_v9 }
0x1402   :  { %v1526_v13 = vpop.eup %1525 }
0x1403   :  { %v936_v14 = vadd.f32 1.0, %v1526_v13  ;;  %v1528_v15 = vpop.eup %1527 }
0x1404   :  { %v1530_v16 = vpop.eup %1529 }
0x1405   :  { %1533 = vrcp.f32 %v936_v14  ;;  %v1532_v17 = vpop.eup %1531  ;;  %v1044_v29 = vsel %vm1693_vm11, %v1528_v15, %v1530_v16 }
0x1412   :  { %v1534_v42 = vpop.eup %1533 }
0x1413   :  { %v939_v18 = vsel %vm1693_vm11, %v1532_v17, %v1534_v42 }
0x1414   :  { %945 = vrot.lane.b32.xlu0 %v939_v18, %s1607_s1  ;;  %v943_v24 = vmul.f32 %v941_v36, %v939_v18 }
0x1418   :  { %1046 = vrot.lane.b32.xlu0 %v1044_v29, %s1607_s1 }
0x1486   :  { %v946_v19 = vpop.permute.xlu0 %945 }
0x1487   :  { %v948_v21 = vmul.f32 %v946_v19, %v939_v18 }
0x1489   :  { %950 = vrot.lane.b32.xlu1 %v948_v21, %s1609_s27 }
0x148a   :  { %v1047_v22 = vpop.permute.xlu0 %1046 }
0x148b   :  { %v1049_v43 = vmul.f32 %v1047_v22, %v1044_v29 }
0x148d   :  { %1535 = vtanh.f32 %v1049_v43 }
0x149a   :  { %v1536_v45 = vpop.eup %1535 }
0x149b   :  { %1052 = vrot.lane.b32.xlu0 %v1536_v45, %s1608_s26 }
0x14fb   :  { %v951_v25 = vpop.permute.xlu1 %950 }
0x14fc   :  { %v953_v26 = vadd.f32 %v951_v25, %v943_v24 }
0x14fe   :  { %1537 = vtanh.f32 %v953_v26 }
0x150b   :  { %v1538_v34 = vpop.eup %1537 }
0x150c   :  { %956 = vrot.lane.b32.xlu1 %v1538_v34, %s1607_s1 }
0x150d   :  { %v1053_v35 = vpop.permute.xlu0 %1052 }
0x150e   :  { %v1055_v37 = vmul.f32 %v1053_v35, %v1044_v29 }
0x1510   :  { %1066 = vrot.lane.b32.xlu1 %v1055_v37, %s1609_s27 }
0x157e   :  { %v957_v38 = vpop.permute.xlu1 %956 }
0x157f   :  { %v959_v39 = vmul.f32 %v957_v38, %v939_v18 }
0x1581   :  { %v1141_v40 = vrot.slane %v959_v39, 7 }
0x1582   :  { %v1067_v41 = vpop.permute.xlu1 %1066 }
0x1583   :  { %1142 = vrot.lane.b32.xlu0 %v1141_v40, %s1609_s27  ;;  %1444 = vmatmul.mubr.msk.f32.vlgmr.msra.gmra.mxu1 %vm101_vm8, %v1067_v41 }
0x15f5   :  { %v1143_v46 = vpop.permute.xlu0 %1142 }
0x15f6   :  { %1455 = vmatmul.mubr.msk.f32.vlgmr.msra.gmra.mxu0 %vm101_vm8, %v1143_v46 }
0x1643   :  { %v1136_v0 = vpop.f32.mrf.mxu1 }
0x1645   :  { %v1445_v47 = vpop.f32.mrf.mxu1 }
0x16b6   :  { %v1212_v48 = vpop.f32.mrf.mxu0 }
0x16b7   :  { %v1213_v50 = vadd.f32 %v1212_v48, %v1136_v0 }
0x16b8   :  { %v1456_v51 = vpop.f32.mrf.mxu0 }
0x16b9   :  { %v1216_v52 = vadd.f32 %v1213_v50, %v1064_v49 }
0x16bb   :  { %v1218_v53 = vsel %vm1217_vm12, %v1216_v52, -inf }
0x16bc   :  { %1219 = vmax.xlane.f32.xlu1 %v1218_v53 }
0x1745   :  { %v1220_v54 = vpop.xlane.xlu1 %1219 }
0x1746   :  { %v1221_v55 = vsub.f32 %v1216_v52, %v1220_v54 }
0x1748   :  { %v1222_v56 = vmul.f32 1.442695, %v1221_v55 }
0x174a   :  { %1539 = vpow2.f32 %v1222_v56 }
0x1757   :  { %v1540_v57 = vpop.eup %1539 }
0x1758   :  { %v1224_v58 = vsel %vm1217_vm12, %v1540_v57, 0.0 }
0x1759   :  { %1225 = vadd.xlane.f32.xlu0 %v1224_v58 }
0x17e2   :  { %v1226_v59 = vpop.xlane.xlu0 %1225 }
0x17e3   :  { %1541 = vrcp.f32 %v1226_v59 }
0x17f0   :  { %v1542_v60 = vpop.eup %1541 }
0x17f1   :  { %v1228_v61 = vmul.f32 %v1542_v60, %v1540_v57 }
0x17f3   :  { %1229 = vst.msk [vmem:[#allocation7] sm:$0x1] %vm1217_vm12, %v1228_v61 }
0x17f4   :  { %1586 = shalt.err (!%p1583_p0)
}
0x17f5   :  { %1239 = dma.vmem_to_hbm [thread:$0]  %s1237_s28, 16, %s1871_s3, [#allocation6]  }
0x17f6   :  { %1599 = dma.done.wait [#allocation6], 16  }
0x17f7   :  { %1600 = vsyncadd [#allocation6], 4294967280 }
0x17f8   :  { %1243 = vsyncpa [#allocation5], 1 }
0x17f9   :  { %1244 = vsyncpa [#allocation6], 1 }

</bundles_post_ra>
